<compile_context>
chip_gen: v6e
topology: v6e:2x2x1
jax: 0.10.0
libtpu: 0.0.40
codegen_flags: <defaults>
</compile_context>

<pallas_src>
import functools

import jax
import jax.numpy as jnp
from jax.experimental import pallas as pl
from jax.experimental.pallas import tpu as pltpu

LN_EPS = 1e-5  # torch nn.LayerNorm default eps


def _round_up(x, m):
    return (x + m - 1) // m * m


def _cdiv(a, b):
    return (a + b - 1) // b


def _device_vmem_bytes():
    """Per-core VMEM capacity; conservative 64 MiB fallback (v7x) if unknown."""
    try:
        info = pltpu.get_tpu_info()
        cap = getattr(info, "vmem_capacity_bytes", None)
        if cap:
            return int(cap)
    except Exception:
        pass
    return 64 * 1024 * 1024


def _ln_residual(z, gamma, beta, inv_d, out_dtype):
    """Single-pass LayerNorm (sum / sum-of-squares) in f32."""
    s1 = jnp.sum(z, axis=-1, keepdims=True)
    s2 = jnp.sum(z * z, axis=-1, keepdims=True)
    mean = s1 * inv_d
    var = jnp.maximum(s2 * inv_d - mean * mean, 0.0)
    zn = (z - mean) * jax.lax.rsqrt(var + LN_EPS)
    return (zn * gamma + beta).astype(out_dtype)


def ffn_kernel_single(x_ref, w1_ref, b1_ref, w2_ref, b2_ref, g_ref, beta_ref,
                      o_ref, *, inv_d):
    """Whole hidden dim in one chunk: no accumulator scratch, direct write."""
    x = x_ref[...]
    h = jnp.dot(x, w1_ref[...], preferred_element_type=jnp.float32)
    h = jnp.maximum(h + b1_ref[...].astype(jnp.float32), 0.0)
    y = jnp.dot(h.astype(x.dtype), w2_ref[...],
                preferred_element_type=jnp.float32)
    # TODO(synk): nn.Dropout omitted (identity in eval/inference mode).
    z = y + b2_ref[...].astype(jnp.float32) + x.astype(jnp.float32)
    o_ref[...] = _ln_residual(z, g_ref[...].astype(jnp.float32),
                              beta_ref[...].astype(jnp.float32),
                              inv_d, o_ref.dtype)


def ffn_kernel_chunked(x_ref, w1_ref, b1_ref, w2_ref, b2_ref, g_ref, beta_ref,
                       o_ref, acc_ref, *, inv_d):
    """Grid (row tiles, hidden chunks); acc_ref is a (bm, D) f32 accumulator."""
    h_idx = pl.program_id(1)

    @pl.when(h_idx == 0)
    def _():
        acc_ref[...] = jnp.zeros_like(acc_ref)

    x = x_ref[...]
    h = jnp.dot(x, w1_ref[...], preferred_element_type=jnp.float32)
    h = jnp.maximum(h + b1_ref[...].astype(jnp.float32), 0.0)
    acc_ref[...] += jnp.dot(h.astype(x.dtype), w2_ref[...],
                            preferred_element_type=jnp.float32)

    # TODO(synk): nn.Dropout omitted (identity in eval/inference mode).

    @pl.when(h_idx == pl.num_programs(1) - 1)
    def _():
        z = acc_ref[...] + b2_ref[...].astype(jnp.float32) + x.astype(jnp.float32)
        o_ref[...] = _ln_residual(z, g_ref[...].astype(jnp.float32),
                                  beta_ref[...].astype(jnp.float32),
                                  inv_d, o_ref.dtype)


@functools.partial(jax.jit,
                   static_argnames=("block_rows", "hidden_block",
                                    "compute_dtype"))
def positionwise_ffn(x, w1, b1, w2, b2, gamma, beta, *,
                     block_rows=1024, hidden_block=1024, compute_dtype=None):
    """x: (B, S, D). Weights stored as (in, out). Returns (B, S, D)."""
    B, S, D = x.shape
    H = w1.shape[1]
    N = B * S
    out_dtype = x.dtype

    # ---- hidden-dim chunking (always chunk when H > hidden_block) ----------
    hidden_block = max(128, (hidden_block // 128) * 128)
    if H <= hidden_block:
        th, h_pad = H, H
    else:
        th = hidden_block
        h_pad = _round_up(H, th)          # zero-pad: relu(0)*0 contributes 0
    num_h = h_pad // th

    # ---- operands (optional bf16 compute path; f32 accum/epilogue kept) ----
    x2 = x.reshape(N, D)
    if compute_dtype is not None:
        x2 = x2.astype(compute_dtype)
        w1 = w1.astype(compute_dtype)
        w2 = w2.astype(compute_dtype)
    if h_pad != H:
        w1 = jnp.pad(w1, ((0, 0), (0, h_pad - H)))
        b1 = jnp.pad(b1, ((0, h_pad - H),))
        w2 = jnp.pad(w2, ((0, h_pad - H), (0, 0)))

    itemsize = jnp.dtype(x2.dtype).itemsize
    w_itemsize = jnp.dtype(w1.dtype).itemsize

    # ---- row tiling: balanced tiles, >=2 tiles when possible (2 TCs) -------
    n_tiles_target = max(_cdiv(N, block_rows), 2 if N >= 16 else 1)
    bm = max(8, _round_up(_cdiv(N, n_tiles_target), 8))

    budget = int(_device_vmem_bytes() * 0.85)

    def _vmem_need(bm_):
        io = 4 * bm_ * D * itemsize                       # x + out, 2-buffered
        if num_h == 1:
            wbytes = 2 * D * th * w_itemsize              # w1+w2 single-buffered
            acc = 0
        else:
            wbytes = 2 * 2 * D * th * w_itemsize          # w1+w2 double-buffered
            acc = bm_ * D * 4                             # f32 accumulator
        hid = bm_ * th * (4 + itemsize)                   # f32 h + cast copy
        zbuf = bm_ * D * 4                                # f32 epilogue tile
        small = 4 * (th + 3 * D) * w_itemsize             # biases/gamma/beta
        return io + wbytes + acc + hid + zbuf + small

    while _vmem_need(bm) > budget and bm > 8:
        bm = max(8, _round_up(bm // 2, 8))

    n_pad = _round_up(N, bm)
    n_row_tiles = n_pad // bm
    if n_pad != N:
        x2 = jnp.pad(x2, ((0, n_pad - N), (0, 0)))

    vmem_limit = int(min(max(_vmem_need(bm) * 3 // 2, 32 * 1024 * 1024),
                         budget))

    # ---- 1-D params as lane-major (1, dim) tiles ----------------------------
    b1_2 = b1.reshape(1, h_pad)
    b2_2 = b2.reshape(1, D)
    g_2 = gamma.reshape(1, D)
    be_2 = beta.reshape(1, D)

    # Weights are re-streamed from HBM once per row tile -> count it.
    cost = pl.CostEstimate(
        flops=4 * n_pad * D * h_pad + 10 * n_pad * D,
        transcendentals=n_pad,
        bytes_accessed=(2 * n_pad * D * itemsize
                        + n_row_tiles * 2 * D * h_pad * w_itemsize
                        + (h_pad + 3 * D) * w_itemsize),
    )

    const_buf = pl.Buffered(1)
    inv_d = 1.0 / D

    if num_h == 1:
        grid_spec = pltpu.PrefetchScalarGridSpec(
            num_scalar_prefetch=0,
            grid=(n_row_tiles,),
            in_specs=[
                pl.BlockSpec((bm, D), lambda i: (i, 0)),                       # x
                pl.BlockSpec((D, th), lambda i: (0, 0), pipeline_mode=const_buf),  # w1
                pl.BlockSpec((1, th), lambda i: (0, 0), pipeline_mode=const_buf),  # b1
                pl.BlockSpec((th, D), lambda i: (0, 0), pipeline_mode=const_buf),  # w2
                pl.BlockSpec((1, D), lambda i: (0, 0), pipeline_mode=const_buf),   # b2
                pl.BlockSpec((1, D), lambda i: (0, 0), pipeline_mode=const_buf),   # gamma
                pl.BlockSpec((1, D), lambda i: (0, 0), pipeline_mode=const_buf),   # beta
            ],
            out_specs=pl.BlockSpec((bm, D), lambda i: (i, 0)),
            scratch_shapes=[],
        )
        kernel = functools.partial(ffn_kernel_single, inv_d=inv_d)
        semantics = ("parallel",)
    else:
        grid_spec = pltpu.PrefetchScalarGridSpec(
            num_scalar_prefetch=0,
            grid=(n_row_tiles, num_h),
            in_specs=[
                pl.BlockSpec((bm, D), lambda i, h: (i, 0)),                    # x
                pl.BlockSpec((D, th), lambda i, h: (0, h)),                    # w1 chunk
                pl.BlockSpec((1, th), lambda i, h: (0, h)),                    # b1 chunk
                pl.BlockSpec((th, D), lambda i, h: (h, 0)),                    # w2 chunk
                pl.BlockSpec((1, D), lambda i, h: (0, 0), pipeline_mode=const_buf),  # b2
                pl.BlockSpec((1, D), lambda i, h: (0, 0), pipeline_mode=const_buf),  # gamma
                pl.BlockSpec((1, D), lambda i, h: (0, 0), pipeline_mode=const_buf),  # beta
            ],
            out_specs=pl.BlockSpec((bm, D), lambda i, h: (i, 0)),
            scratch_shapes=[pltpu.VMEM((bm, D), jnp.float32)],
        )
        kernel = functools.partial(ffn_kernel_chunked, inv_d=inv_d)
        semantics = ("parallel", "arbitrary")

    out = pl.pallas_call(
        kernel,
        out_shape=jax.ShapeDtypeStruct((n_pad, D), out_dtype),
        grid_spec=grid_spec,
        compiler_params=pltpu.CompilerParams(
            dimension_semantics=semantics,
            vmem_limit_bytes=vmem_limit,
        ),
        cost_estimate=cost,
    )(x2, w1, b1_2, w2, b2_2, g_2, be_2)

    if n_pad != N:
        out = out[:N]
    return out.reshape(B, S, D)


def reference_ffn(x, w1, b1, w2, b2, gamma, beta):
    h = jnp.maximum(x @ w1 + b1, 0.0)
    y = h @ w2 + b2
    z = y + x
    mean = jnp.mean(z, axis=-1, keepdims=True)
    var = jnp.var(z, axis=-1, keepdims=True)
    zn = (z - mean) / jnp.sqrt(var + LN_EPS)
    return zn * gamma + beta


def _make_params(key, D, H, dtype=jnp.float32):
    k1, k2, k3, k4 = jax.random.split(key, 4)
    lim1 = 1.0 / (D ** 0.5)
    lim2 = 1.0 / (H ** 0.5)
    # Stored as (in, out) so the kernel does x @ W directly (torch stores (out, in)).
    w1 = jax.random.uniform(k1, (D, H), minval=-lim1, maxval=lim1, dtype=dtype)
    b1 = jax.random.uniform(k2, (H,), minval=-lim1, maxval=lim1, dtype=dtype)
    w2 = jax.random.uniform(k3, (H, D), minval=-lim2, maxval=lim2, dtype=dtype)
    b2 = jax.random.uniform(k4, (D,), minval=-lim2, maxval=lim2, dtype=dtype)
    gamma = jnp.ones((D,), dtype=dtype)   # nn.LayerNorm weight init
    beta = jnp.zeros((D,), dtype=dtype)   # nn.LayerNorm bias init
    return w1, b1, w2, b2, gamma, beta


if __name__ == "__main__":
    key = jax.random.PRNGKey(0)
    kx, kp1, kx2, kp2 = jax.random.split(key, 4)

    # --- Test 1: single hidden chunk path (small shapes, row padding) -------
    B, S, D, H = 2, 9, 32, 64
    x = jax.random.normal(kx, (B, S, D), dtype=jnp.float32)
    params = _make_params(kp1, D, H)
    out = jax.block_until_ready(positionwise_ffn(x, *params))
    ref = reference_ffn(x, *params)
    assert out.shape == (B, S, D)
    assert jnp.allclose(out, ref, atol=1e-4, rtol=1e-4), "mismatch (single chunk)"

    # --- Test 2: chunked hidden path (H padded 200 -> 256, two h chunks) ----
    B2, S2, D2, H2 = 2, 9, 32, 200
    x_c = jax.random.normal(kx2, (B2, S2, D2), dtype=jnp.float32)
    params_c = _make_params(kp2, D2, H2)
    out_c = jax.block_until_ready(
        positionwise_ffn(x_c, *params_c, hidden_block=128))
    ref_c = reference_ffn(x_c, *params_c)
    assert out_c.shape == (B2, S2, D2)
    assert jnp.allclose(out_c, ref_c, atol=1e-4, rtol=1e-4), "mismatch (chunked)"

    print("KERNEL_OK")
</pallas_src>

<mosaic_0001>
module attributes {stable_mosaic.version = 11 : i64} {
  func.func @ffn_kernel_single(%arg0: i32, %arg1: memref<16x32xf32, #tpu.memory_space<vmem>>, %arg2: memref<32x64xf32, #tpu.memory_space<vmem>>, %arg3: memref<1x64xf32, #tpu.memory_space<vmem>>, %arg4: memref<64x32xf32, #tpu.memory_space<vmem>>, %arg5: memref<1x32xf32, #tpu.memory_space<vmem>>, %arg6: memref<1x32xf32, #tpu.memory_space<vmem>>, %arg7: memref<1x32xf32, #tpu.memory_space<vmem>>, %arg8: memref<16x32xf32, #tpu.memory_space<vmem>>) attributes {dimension_semantics = [#tpu.dimension_semantics<parallel>], iteration_bounds = array<i64: 2>, scalar_prefetch = 0 : i64, scratch_operands = 0 : i64, tpu.core_type = #tpu.core_type<tc>, window_params = [{transform_indices = @transform_0, window_bounds = array<i64: 16, 32>}, {pipeline_mode = #tpu.pipeline_mode<synchronous>, transform_indices = @transform_1, window_bounds = array<i64: 32, 64>}, {pipeline_mode = #tpu.pipeline_mode<synchronous>, transform_indices = @transform_2, window_bounds = array<i64: 1, 64>}, {pipeline_mode = #tpu.pipeline_mode<synchronous>, transform_indices = @transform_3, window_bounds = array<i64: 64, 32>}, {pipeline_mode = #tpu.pipeline_mode<synchronous>, transform_indices = @transform_4, window_bounds = array<i64: 1, 32>}, {pipeline_mode = #tpu.pipeline_mode<synchronous>, transform_indices = @transform_5, window_bounds = array<i64: 1, 32>}, {pipeline_mode = #tpu.pipeline_mode<synchronous>, transform_indices = @transform_6, window_bounds = array<i64: 1, 32>}, {transform_indices = @transform_7, window_bounds = array<i64: 16, 32>}]} {
    %c0 = arith.constant 0 : index
    %c0_0 = arith.constant 0 : index
    %0 = vector.load %arg1[%c0, %c0_0] : memref<16x32xf32, #tpu.memory_space<vmem>>, vector<16x32xf32>
    %c0_1 = arith.constant 0 : index
    %c0_2 = arith.constant 0 : index
    %1 = vector.load %arg2[%c0_1, %c0_2] : memref<32x64xf32, #tpu.memory_space<vmem>>, vector<32x64xf32>
    %cst = arith.constant dense<0.000000e+00> : vector<16x64xf32>
    %2 = tpu.matmul %0, %1, %cst {dimension_numbers = #tpu.dot_dimension_numbers<[1], [0], [0], [1], [0, 0, 1, 1], [], []>} : vector<16x32xf32>, vector<32x64xf32>, vector<16x64xf32> -> vector<16x64xf32>
    %c0_3 = arith.constant 0 : index
    %c0_4 = arith.constant 0 : index
    %3 = vector.load %arg3[%c0_3, %c0_4] : memref<1x64xf32, #tpu.memory_space<vmem>>, vector<1x64xf32>
    %4 = vector.broadcast %3 : vector<1x64xf32> to vector<16x64xf32>
    %5 = arith.addf %2, %4 : vector<16x64xf32>
    %cst_5 = arith.constant 0.000000e+00 : f32
    %6 = vector.broadcast %cst_5 : f32 to vector<16x64xf32>
    %7 = arith.maximumf %5, %6 : vector<16x64xf32>
    %c0_6 = arith.constant 0 : index
    %c0_7 = arith.constant 0 : index
    %8 = vector.load %arg4[%c0_6, %c0_7] : memref<64x32xf32, #tpu.memory_space<vmem>>, vector<64x32xf32>
    %cst_8 = arith.constant dense<0.000000e+00> : vector<16x32xf32>
    %9 = tpu.matmul %7, %8, %cst_8 {dimension_numbers = #tpu.dot_dimension_numbers<[1], [0], [0], [1], [0, 0, 1, 1], [], []>} : vector<16x64xf32>, vector<64x32xf32>, vector<16x32xf32> -> vector<16x32xf32>
    %c0_9 = arith.constant 0 : index
    %c0_10 = arith.constant 0 : index
    %10 = vector.load %arg5[%c0_9, %c0_10] : memref<1x32xf32, #tpu.memory_space<vmem>>, vector<1x32xf32>
    %11 = vector.broadcast %10 : vector<1x32xf32> to vector<16x32xf32>
    %12 = arith.addf %9, %11 : vector<16x32xf32>
    %13 = arith.addf %12, %0 : vector<16x32xf32>
    %c0_11 = arith.constant 0 : index
    %c0_12 = arith.constant 0 : index
    %14 = vector.load %arg6[%c0_11, %c0_12] : memref<1x32xf32, #tpu.memory_space<vmem>>, vector<1x32xf32>
    %c0_13 = arith.constant 0 : index
    %c0_14 = arith.constant 0 : index
    %15 = vector.load %arg7[%c0_13, %c0_14] : memref<1x32xf32, #tpu.memory_space<vmem>>, vector<1x32xf32>
    %cst_15 = arith.constant dense<0.000000e+00> : vector<16xf32>
    %16 = vector.multi_reduction <add>, %13, %cst_15 [1] : vector<16x32xf32> to vector<16xf32>
    %17 = vector.shape_cast %16 : vector<16xf32> to vector<16x1xf32>
    %18 = arith.mulf %13, %13 : vector<16x32xf32>
    %cst_16 = arith.constant dense<0.000000e+00> : vector<16xf32>
    %19 = vector.multi_reduction <add>, %18, %cst_16 [1] : vector<16x32xf32> to vector<16xf32>
    %20 = vector.shape_cast %19 : vector<16xf32> to vector<16x1xf32>
    %cst_17 = arith.constant 3.125000e-02 : f32
    %21 = vector.broadcast %cst_17 : f32 to vector<16x1xf32>
    %22 = arith.mulf %17, %21 : vector<16x1xf32>
    %cst_18 = arith.constant 3.125000e-02 : f32
    %23 = vector.broadcast %cst_18 : f32 to vector<16x1xf32>
    %24 = arith.mulf %20, %23 : vector<16x1xf32>
    %25 = arith.mulf %22, %22 : vector<16x1xf32>
    %26 = arith.subf %24, %25 : vector<16x1xf32>
    %cst_19 = arith.constant 0.000000e+00 : f32
    %27 = vector.broadcast %cst_19 : f32 to vector<16x1xf32>
    %28 = arith.maximumf %26, %27 : vector<16x1xf32>
    %29 = vector.broadcast %22 : vector<16x1xf32> to vector<16x32xf32>
    %30 = arith.subf %13, %29 : vector<16x32xf32>
    %cst_20 = arith.constant 9.99999974E-6 : f32
    %31 = vector.broadcast %cst_20 : f32 to vector<16x1xf32>
    %32 = arith.addf %28, %31 : vector<16x1xf32>
    %33 = math.rsqrt %32 : vector<16x1xf32>
    %34 = vector.broadcast %33 : vector<16x1xf32> to vector<16x32xf32>
    %35 = arith.mulf %30, %34 : vector<16x32xf32>
    %36 = vector.broadcast %14 : vector<1x32xf32> to vector<16x32xf32>
    %37 = arith.mulf %35, %36 : vector<16x32xf32>
    %38 = vector.broadcast %15 : vector<1x32xf32> to vector<16x32xf32>
    %39 = arith.addf %37, %38 : vector<16x32xf32>
    %c0_21 = arith.constant 0 : index
    %c0_22 = arith.constant 0 : index
    %40 = vector.load %arg8[%c0_21, %c0_22] : memref<16x32xf32, #tpu.memory_space<vmem>>, vector<16x32xf32>
    tpu.vector_store %arg8[%c0_21, %c0_22], %39 {strides = array<i32>} : memref<16x32xf32, #tpu.memory_space<vmem>>, vector<16x32xf32>,
    return
  }
  func.func @transform_0(%arg0: i32) -> (i32, i32) {
    %c0_i32 = arith.constant 0 : i32
    %c0_i32_0 = arith.constant 0 : i32
    return %arg0, %c0_i32 : i32, i32
  }
  func.func @transform_1(%arg0: i32) -> (i32, i32) {
    %c0_i32 = arith.constant 0 : i32
    %c0_i32_0 = arith.constant 0 : i32
    %c0_i32_1 = arith.constant 0 : i32
    return %c0_i32, %c0_i32_0 : i32, i32
  }
  func.func @transform_2(%arg0: i32) -> (i32, i32) {
    %c0_i32 = arith.constant 0 : i32
    %c0_i32_0 = arith.constant 0 : i32
    %c0_i32_1 = arith.constant 0 : i32
    return %c0_i32, %c0_i32_0 : i32, i32
  }
  func.func @transform_3(%arg0: i32) -> (i32, i32) {
    %c0_i32 = arith.constant 0 : i32
    %c0_i32_0 = arith.constant 0 : i32
    %c0_i32_1 = arith.constant 0 : i32
    return %c0_i32, %c0_i32_0 : i32, i32
  }
  func.func @transform_4(%arg0: i32) -> (i32, i32) {
    %c0_i32 = arith.constant 0 : i32
    %c0_i32_0 = arith.constant 0 : i32
    %c0_i32_1 = arith.constant 0 : i32
    return %c0_i32, %c0_i32_0 : i32, i32
  }
  func.func @transform_5(%arg0: i32) -> (i32, i32) {
    %c0_i32 = arith.constant 0 : i32
    %c0_i32_0 = arith.constant 0 : i32
    %c0_i32_1 = arith.constant 0 : i32
    return %c0_i32, %c0_i32_0 : i32, i32
  }
  func.func @transform_6(%arg0: i32) -> (i32, i32) {
    %c0_i32 = arith.constant 0 : i32
    %c0_i32_0 = arith.constant 0 : i32
    %c0_i32_1 = arith.constant 0 : i32
    return %c0_i32, %c0_i32_0 : i32, i32
  }
  func.func @transform_7(%arg0: i32) -> (i32, i32) {
    %c0_i32 = arith.constant 0 : i32
    %c0_i32_0 = arith.constant 0 : i32
    return %arg0, %c0_i32 : i32, i32
  }
}

</mosaic_0001>

<bundles_post_ra>
// kernel: positionwise_ffn.1
= control target key start
LH: loop header
LB: loop body
LE: loop exit
PB: predicated region body
PF: predicated region fallthrough
CT: control target
= control target key end

     0   :  { %s711_s24 = smov 0   ;;  %s791_s0 = inlined_call_operand.vmem [shape: f32[32,32], index: 0, kind: input, shape index: {}]   ;;  %s792_s1 = inlined_call_operand.vmem [shape: f32[32,64], index: 1, kind: input, shape index: {}]   ;;  %s793_s2 = inlined_call_operand.vmem [shape: f32[1,64], index: 2, kind: input, shape index: {}]   ;;  %s794_s3 = inlined_call_operand.vmem [shape: f32[64,32], index: 3, kind: input, shape index: {}]   ;;  %s795_s4 = inlined_call_operand.vmem [shape: f32[1,32], index: 4, kind: input, shape index: {}]   ;;  %s796_s5 = inlined_call_operand.vmem [shape: f32[1,32], index: 5, kind: input, shape index: {}]   ;;  %s797_s6 = inlined_call_operand.vmem [shape: f32[1,32], index: 6, kind: input, shape index: {}]   ;;  %s798_s7 = inlined_call_operand.vmem [shape: f32[32,32], index: 7, kind: output, shape index: {}]  }
   0x1 LB: > { %s586_s25 = sadd.s32 4294967295, %s669_s24   ;;  %p590_p0 = scmp.ge.s32.totalorder %s669_s24, 1  ;;  %s669_s24 = sphi %s711_s24, %s17_s24  }
   0x2   : > { %p238_p1 = scmp.lt.s32.totalorder %s669_s24, 3 }
   0x4   : > { %p239_p2 = pnand %p590_p0, %p238_p1 }
   0x5   : > { %s591_s30 = sshll.u32 (!%p239_p2), %s586_s25, 1 }
   0x6   : > { %242 = sbr.rel (%p239_p2) target bundleno = 593 (0x251), region = 48  ;;  %p271_p3 = scmp.lt.s32.totalorder (!%p239_p2), %s591_s30, 3 }
   0xb   : > { %v287_v0 = vld [vmem:[%s792_s1 + $0x18] sm:$0xff]  ;;  %v286_v1 = vld [vmem:[%s792_s1 + $0x10] sm:$0xff]  ;;  %v285_v4 = vld [vmem:[%s792_s1 + $0x8] sm:$0xff]  ;;  %s800_s30 = smov (!%p271_p3, %s591_s30), 3  ;;  %vm295_vm0 = vcmask 261120   ;;  %vm394_vm1 = vcmask 523264  }
   0xc   : > { %621 = vmatprep.subr.mxu0 %v287_v0  ;;  %v386_v2 = vld [vmem:[%s794_s3 + $0x38] sm:$0xff]  ;;  %v385_v3 = vld [vmem:[%s794_s3 + $0x30] sm:$0xff]  ;;  %v384_v5 = vld [vmem:[%s794_s3 + $0x28] sm:$0xff]  ;;  %s592_s18 = sshll.u32 %s800_s30, 3 }
   0xd   : > { %622 = vmatpush3.msra.mxu0 %v287_v0  ;;  %632 = vmatprep.subr.mxu1 %v386_v2  ;;  %v284_v6 = vld [vmem:[%s792_s1] sm:$0xff]  ;;  %s274_s21 = scalar_lea.vmem %s791_s0, %s592_s18  ;;  %v382_v10 = vld [vmem:[%s794_s3 + $0x18] sm:$0xff]  ;;  %v381_v11 = vld [vmem:[%s794_s3 + $0x10] sm:$0xff]  ;;  %s280_s22 = scalar_lea.vmem %s798_s7, %s592_s18 }
   0xe   : > { %623 = vmatprep.subr.mxu0 %v286_v1  ;;  %633 = vmatpush3.msra.mxu1 %v386_v2  ;;  %v383_v7 = vld [vmem:[%s794_s3 + $0x20] sm:$0xff]  ;;  %v283_v9 = vld [vmem:[%s274_s21 + $0x8] sm:$0xff] }
   0xf   : > { %624 = vmatpush3.msra.mxu0 %v286_v1  ;;  %634 = vmatprep.subr.mxu1 %v385_v3  ;;  %v282_v8 = vld [vmem:[%s274_s21] sm:$0xff]  ;;  %v380_v12 = vld [vmem:[%s794_s3 + $0x8] sm:$0xff] }
  0x10   : > { %625 = vmatprep.subr.mxu0 %v285_v4  ;;  %635 = vmatpush3.msra.mxu1 %v385_v3  ;;  %v379_v13 = vld [vmem:[%s794_s3] sm:$0xff] }
  0x11   : > { %626 = vmatpush3.msra.mxu0 %v285_v4  ;;  %636 = vmatprep.subr.mxu1 %v384_v5  ;;  %v595_v14 = vld [vmem:[%s793_s2] ss:$0 sm:$0xff] }
  0x12   : > { %627 = vmatprep.subr.mxu0 %v284_v6  ;;  %637 = vmatpush3.msra.mxu1 %v384_v5  ;;  %v598_v21 = vld [vmem:[%s795_s4] ss:$0 sm:$0xff] }
  0x13   : > { %628 = vmatpush3.msra.mxu0 %v284_v6  ;;  %629 = vmatprep.mubr.msk.f32.mxu0 %vm295_vm0, %v282_v8  ;;  %v601_v52 = vld [vmem:[%s796_s5] ss:$0 sm:$0xff] }
  0x14   : > { %630 = vmatmul.mubr.msk.f32.vlgmr.msra.gmra.mxu0 %vm295_vm0, %v283_v9  ;;  %638 = vmatprep.subr.mxu1 %v383_v7  ;;  %v602_v54 = vld [vmem:[%s797_s6] ss:$0 sm:$0xff] }
  0x15   : > { %639 = vmatpush3.msra.mxu1 %v383_v7 }
  0x16   : > { %640 = vmatprep.subr.mxu1 %v382_v10 }
  0x17   : > { %641 = vmatpush3.msra.mxu1 %v382_v10 }
  0x18   : > { %642 = vmatprep.subr.mxu1 %v381_v11 }
  0x19   : > { %643 = vmatpush3.msra.mxu1 %v381_v11 }
  0x1a   : > { %644 = vmatprep.subr.mxu1 %v380_v12 }
  0x1b   : > { %645 = vmatpush3.msra.mxu1 %v380_v12 }
  0x1c   : > { %646 = vmatprep.subr.mxu1 %v379_v13 }
  0x1d   : > { %647 = vmatpush3.msra.mxu1 %v379_v13 }
  0xd4   : > { %v631_v15 = vpop.f32.mrf.mxu0 }
  0xd5   : > { %v374_v16 = vadd.f32 %v631_v15, %v595_v14 }
  0xd6   : > { %v368_v17 = vpop.f32.mrf.mxu0 }
  0xd7   : > { %v369_v18 = vadd.f32 %v595_v14, %v368_v17  ;;  %v378_v20 = vmax.f32 %v374_v16, 0.0 }
  0xd9   : > { %v377_v19 = vmax.f32 %v369_v18, 0.0 }
  0xdb   : > { %648 = vmatprep.mubr.msk.f32.mxu1 %vm394_vm1, %v377_v19 }
  0xdc   : > { %649 = vmatmul.mubr.msk.f32.vlgmr.msra.gmra.mxu1 %vm394_vm1, %v378_v20 }
 0x19c   : > { %v650_v22 = vpop.f32.mrf.mxu1 }
 0x19d   : > { %v473_v23 = vadd.f32 %v650_v22, %v598_v21 }
 0x19e   : > { %v467_v24 = vpop.f32.mrf.mxu1 }
 0x19f   : > { %v468_v25 = vadd.f32 %v598_v21, %v467_v24  ;;  %v477_v26 = vadd.f32 %v473_v23, %v283_v9 }
 0x1a1   : > { %v476_v27 = vadd.f32 %v468_v25, %v282_v8  ;;  %v487_v31 = vmul.f32 %v477_v26, %v477_v26  ;;  %v483_v32 = vsel %vm295_vm0, %v477_v26, 0.0 }
 0x1a3   : > { %v480_v28 = vsel %vm295_vm0, %v476_v27, 0.0  ;;  %v486_v29 = vmul.f32 %v476_v27, %v476_v27  ;;  %v491_v33 = vsel %vm295_vm0, %v487_v31, 0.0 }
 0x1a4   : > { %481 = vadd.xlane.f32.xlu0 %v480_v28 }
 0x1a5   : > { %v488_v30 = vsel %vm295_vm0, %v486_v29, 0.0 }
 0x1a6   : > { %489 = vadd.xlane.f32.xlu1 %v488_v30 }
 0x1a8   : > { %484 = vadd.xlane.f32.xlu0 %v483_v32 }
 0x1aa   : > { %492 = vadd.xlane.f32.xlu1 %v491_v33 }
 0x22d   : > { %v482_v34 = vpop.xlane.xlu0 %481 }
 0x22e   : > { %v494_v35 = vmul.f32 0.03125, %v482_v34 }
 0x22f   : > { %v490_v36 = vpop.xlane.xlu1 %489 }
 0x230   : > { %v498_v37 = vmul.f32 %v494_v35, %v494_v35  ;;  %v496_v38 = vmul.f32 0.03125, %v490_v36  ;;  %v504_v50 = vsub.f32 %v476_v27, %v494_v35 }
 0x231   : > { %v485_v39 = vpop.xlane.xlu0 %484 }
 0x232   : > { %v500_v40 = vsub.f32 %v496_v38, %v498_v37  ;;  %v495_v41 = vmul.f32 0.03125, %v485_v39 }
 0x233   : > { %v493_v42 = vpop.xlane.xlu1 %492 }
 0x234   : > { %v502_v43 = vmax.f32 %v500_v40, 0.0  ;;  %v499_v44 = vmul.f32 %v495_v41, %v495_v41  ;;  %v497_v45 = vmul.f32 0.03125, %v493_v42  ;;  %v505_v56 = vsub.f32 %v477_v26, %v495_v41 }
 0x236   : > { %v506_v46 = vadd.f32 1e-05, %v502_v43  ;;  %v501_v47 = vsub.f32 %v497_v45, %v499_v44 }
 0x238   : > { %659 = vrsqrt.f32 %v506_v46  ;;  %v503_v48 = vmax.f32 %v501_v47, 0.0 }
 0x23a   : > { %v507_v49 = vadd.f32 1e-05, %v503_v48 }
 0x23c   : > { %661 = vrsqrt.f32 %v507_v49 }
 0x245   : > { %v660_v51 = vpop.eup %659 }
 0x246   : > { %v510_v53 = vmul.f32 %v660_v51, %v504_v50 }
 0x248   : > { %v518_v55 = vmul.f32 %v601_v52, %v510_v53 }
 0x249   : > { %v662_v57 = vpop.eup %661 }
 0x24a   : > { %v526_v58 = vadd.f32 %v602_v54, %v518_v55  ;;  %v511_v59 = vmul.f32 %v662_v57, %v505_v56 }
 0x24c   : > { %528 = vst.msk [vmem:[%s280_s22] sm:$0xff] %vm295_vm0, %v526_v58  ;;  %v519_v60 = vmul.f32 %v601_v52, %v511_v59 }
 0x24e   : > { %v527_v61 = vadd.f32 %v602_v54, %v519_v60 }
 0x250   : > { %529 = vst.msk [vmem:[%s280_s22 + $0x8] sm:$0xff] %vm295_vm0, %v527_v61 }
 0x251 PF: > { %s17_s24 = sadd.s32 1, %s669_s24  }
 0x252   : > { %p14_p4 = scmp.ge.s32.totalorder %s17_s24, 4  }
 0x254   :  { %16 = sbr.rel (!%p14_p4) target bundleno = 1 (0x1), region = 78 }

</bundles_post_ra>
